<compile_context>
chip_gen: v7x
topology: tpu7x:2x2x1
jax: 0.10.0
libtpu: 0.0.40
codegen_flags: <defaults>
</compile_context>

<pallas_src>
import math

import jax
import jax.numpy as jnp
from jax.experimental import pallas as pl
from jax.experimental.pallas import tpu as pltpu


def _gwl_kernel(x_ref, w_ref, b_ref, o_ref, acc_ref):
    # x_ref: (TB, TK)  w_ref: (TK, C)  b_ref: (1, C)  o_ref: (TB, C)
    k = pl.program_id(1)

    @pl.when(k == 0)
    def _():
        acc_ref[...] = jnp.zeros_like(acc_ref)

    # MXU matmul; bf16/f32 inputs accumulate in f32 natively.
    acc_ref[...] += jnp.dot(x_ref[...], w_ref[...],
                            preferred_element_type=jnp.float32)

    @pl.when(k == pl.num_programs(1) - 1)
    def _():
        o_ref[...] = (acc_ref[...] +
                      b_ref[...].astype(jnp.float32)).astype(o_ref.dtype)


def _round_up(n, m):
    return -(-n // m) * m


_SUBLANE_MIN = {4: 8, 2: 16, 1: 32}   # itemsize -> minimal sublane tile


def _vmem_budget():
    """Generation-aware (vmem_limit_bytes, target_block_bytes)."""
    try:
        phys = int(pltpu.get_tpu_info().vmem_capacity_bytes)
    except Exception:
        phys = 64 * 1024 * 1024       # conservative: smallest (v7x per-TC)
    limit = (phys * 3) // 4           # 96 MiB on v5e/v6e, 48 MiB on v7x
    target = limit // 6               # double-buffered x stream ~= limit / 3
    return limit, target


def _choose_tiles(B, K, itemsize, target_block_bytes):
    """Pick (TB, TK) so one PADDED x block fits `target_block_bytes`."""
    sublane = _SUBLANE_MIN.get(itemsize, 8)
    lane_row = _round_up(K, 128) * itemsize       # padded bytes of one row

    # Batch tile: multiple of 8 (aligned output store), budget bound, and
    # >= 4 grid steps when B allows (>= 2 iterations per TC on v7x megacore).
    if B <= 8:
        tb = B
    else:
        tb = max(8, (target_block_bytes // lane_row) // 8 * 8)
        tb = min(tb, max(8, _round_up(pl.cdiv(B, 4), 8)))

    # Reduction tile: full K if the padded (tb, K) block fits, otherwise a
    # multiple of 128 sized against the budget.
    tb_pad = _round_up(max(tb, 1), sublane)
    if K <= 128 or tb_pad * lane_row <= target_block_bytes:
        tk = K
    else:
        lanes = max(1, target_block_bytes // (tb_pad * 128 * itemsize))
        tk = min(_round_up(K, 128), lanes * 128)
    return tb, tk


def group_wise_linear(x, W, b, *, target_block_bytes=None,
                      vmem_limit_bytes=None):
    """x: (B, C, D); W: (1, C, D); b: (1, C)  ->  (B, C) float32."""
    B, C, D = x.shape
    assert W.shape == (1, C, D)
    assert b.shape == (1, C)

    auto_limit, auto_target = _vmem_budget()
    if vmem_limit_bytes is None:
        vmem_limit_bytes = auto_limit
    if target_block_bytes is None:
        target_block_bytes = auto_target

    dt = jnp.promote_types(x.dtype, W.dtype)
    itemsize = jnp.dtype(dt).itemsize
    K = C * D

    # Lane-dense stream + block-diagonal selector matrix (exact: * 1.0 / 0.0).
    x_flat = x.reshape(B, K).astype(dt)
    eye = jnp.eye(C, dtype=dt)
    w_sel = (W[0].astype(dt)[:, :, None] * eye[:, None, :]).reshape(K, C)

    TB, TK = _choose_tiles(B, K, itemsize, target_block_bytes)
    nb = pl.cdiv(B, TB)
    nk = pl.cdiv(K, TK)

    # Zero-pad K so partial reduction blocks contribute exactly zero.
    K_pad = nk * TK
    if K_pad != K:
        x_flat = jnp.pad(x_flat, ((0, 0), (0, K_pad - K)))
        w_sel = jnp.pad(w_sel, ((0, K_pad - K), (0, 0)))

    cost = pl.CostEstimate(
        flops=2 * B * K_pad * C,
        transcendentals=0,
        bytes_accessed=itemsize * (B * K_pad + K_pad * C + C) + 4 * B * C,
    )

    return pl.pallas_call(
        _gwl_kernel,
        out_shape=jax.ShapeDtypeStruct((B, C), jnp.float32),
        grid_spec=pltpu.PrefetchScalarGridSpec(
            num_scalar_prefetch=0,
            grid=(nb, nk),
            in_specs=[
                # streamed, lane-dense activation block
                pl.BlockSpec((TB, TK), lambda i, k: (i, k)),
                # weight selector: constant along the batch axis (resident
                # when nk == 1, streamed over k otherwise)
                pl.BlockSpec((TK, C), lambda i, k: (k, 0)),
                # bias: resident
                pl.BlockSpec((1, C), lambda i, k: (0, 0)),
            ],
            out_specs=pl.BlockSpec((TB, C), lambda i, k: (i, 0)),
            scratch_shapes=[pltpu.VMEM((TB, C), jnp.float32)],
        ),
        compiler_params=pltpu.CompilerParams(
            dimension_semantics=("parallel", "arbitrary"),
            vmem_limit_bytes=int(vmem_limit_bytes),
        ),
        cost_estimate=cost,
    )(x_flat, w_sel, b)


def _reference(x, W, b):
    x32 = x.astype(jnp.float32)
    W32 = W.astype(jnp.float32)
    b32 = b.astype(jnp.float32)
    return jnp.sum(W32 * x32, axis=-1) + b32


if __name__ == "__main__":
    key = jax.random.PRNGKey(0)
    k_w, k_b, k_x, k_x2, k_x3, k_x4 = jax.random.split(key, 6)

    num_class, hidden_dim = 8, 32
    # Deterministic parameter init mirroring reset_parameters():
    # uniform(-stdv, stdv) with stdv = 1/sqrt(hidden_dim)
    stdv = 1.0 / math.sqrt(hidden_dim)
    W = jax.random.uniform(k_w, (1, num_class, hidden_dim), jnp.float32,
                           minval=-stdv, maxval=stdv)
    b = jax.random.uniform(k_b, (1, num_class), jnp.float32,
                           minval=-stdv, maxval=stdv)

    # --- Case 1: tiny batch (B=2), single full-extent block -----------------
    x1 = jax.random.normal(k_x, (2, num_class, hidden_dim), jnp.float32)
    out1 = jax.block_until_ready(group_wise_linear(x1, W, b))
    assert out1.shape == (2, num_class)
    assert jnp.allclose(out1, _reference(x1, W, b), atol=1e-5, rtol=1e-5)

    # --- Case 2: batched multi-step grid (4 batch steps) --------------------
    x2 = jax.random.normal(k_x2, (96, num_class, hidden_dim), jnp.float32)
    out2 = jax.block_until_ready(
        group_wise_linear(x2, W, b, target_block_bytes=32 * 1024))
    assert out2.shape == (96, num_class)
    assert jnp.allclose(out2, _reference(x2, W, b), atol=1e-5, rtol=1e-5)

    # --- Case 3: bf16 streaming (half HBM traffic), f32 MXU accumulation ----
    x3 = jax.random.normal(k_x3, (16, num_class, hidden_dim),
                           jnp.float32).astype(jnp.bfloat16)
    W3 = W.astype(jnp.bfloat16)
    b3 = b.astype(jnp.bfloat16)
    out3 = jax.block_until_ready(group_wise_linear(x3, W3, b3))
    assert out3.shape == (16, num_class)
    assert jnp.allclose(out3, _reference(x3, W3, b3), atol=1e-5, rtol=1e-5)

    # --- Case 4: forced K-tiling fallback (accumulator path, nk > 1) --------
    x4 = jax.random.normal(k_x4, (32, num_class, hidden_dim), jnp.float32)
    out4 = jax.block_until_ready(
        group_wise_linear(x4, W, b, target_block_bytes=4 * 1024))
    assert out4.shape == (32, num_class)
    assert jnp.allclose(out4, _reference(x4, W, b), atol=1e-5, rtol=1e-5)

    print("KERNEL_OK")
</pallas_src>

<mosaic_0001>
module attributes {stable_mosaic.version = 11 : i64} {
  func.func @_gwl_kernel(%arg0: i32, %arg1: i32, %arg2: memref<2x256xf32, #tpu.memory_space<vmem>>, %arg3: memref<256x8xf32, #tpu.memory_space<vmem>>, %arg4: memref<1x8xf32, #tpu.memory_space<vmem>>, %arg5: memref<2x8xf32, #tpu.memory_space<vmem>>, %arg6: memref<2x8xf32, #tpu.memory_space<vmem>>) attributes {dimension_semantics = [#tpu.dimension_semantics<parallel>, #tpu.dimension_semantics<arbitrary>], iteration_bounds = array<i64: 1, 1>, scalar_prefetch = 0 : i64, scratch_operands = 1 : i64, tpu.core_type = #tpu.core_type<tc>, window_params = [{transform_indices = @transform_0, window_bounds = array<i64: 2, 256>}, {transform_indices = @transform_1, window_bounds = array<i64: 256, 8>}, {pipeline_mode = #tpu.pipeline_mode<synchronous>, transform_indices = @transform_2, window_bounds = array<i64: 1, 8>}, {transform_indices = @transform_3, window_bounds = array<i64: 2, 8>}]} {
    %c0_i32 = arith.constant 0 : i32
    %0 = arith.cmpi eq, %arg1, %c0_i32 : i32
    %1 = arith.extui %0 : i1 to i32
    %c0_i32_0 = arith.constant 0 : i32
    %2 = arith.cmpi ne, %1, %c0_i32_0 : i32
    scf.if %2 {
      %cst_10 = arith.constant 0.000000e+00 : f32
      %12 = vector.broadcast %cst_10 : f32 to vector<2x8xf32>
      %c0_11 = arith.constant 0 : index
      %c0_12 = arith.constant 0 : index
      %13 = vector.load %arg6[%c0_11, %c0_12] : memref<2x8xf32, #tpu.memory_space<vmem>>, vector<2x8xf32>
      tpu.vector_store %arg6[%c0_11, %c0_12], %12 {strides = array<i32>} : memref<2x8xf32, #tpu.memory_space<vmem>>, vector<2x8xf32>,
    } else {
    }
    %c0 = arith.constant 0 : index
    %c0_1 = arith.constant 0 : index
    %3 = vector.load %arg6[%c0, %c0_1] : memref<2x8xf32, #tpu.memory_space<vmem>>, vector<2x8xf32>
    %c0_2 = arith.constant 0 : index
    %c0_3 = arith.constant 0 : index
    %4 = vector.load %arg2[%c0_2, %c0_3] : memref<2x256xf32, #tpu.memory_space<vmem>>, vector<2x256xf32>
    %c0_4 = arith.constant 0 : index
    %c0_5 = arith.constant 0 : index
    %5 = vector.load %arg3[%c0_4, %c0_5] : memref<256x8xf32, #tpu.memory_space<vmem>>, vector<256x8xf32>
    %cst = arith.constant dense<0.000000e+00> : vector<2x8xf32>
    %6 = tpu.matmul %4, %5, %cst {dimension_numbers = #tpu.dot_dimension_numbers<[1], [0], [0], [1], [0, 0, 1, 1], [], []>} : vector<2x256xf32>, vector<256x8xf32>, vector<2x8xf32> -> vector<2x8xf32>
    %7 = arith.addf %3, %6 : vector<2x8xf32>
    %c0_6 = arith.constant 0 : index
    %c0_7 = arith.constant 0 : index
    %8 = vector.load %arg6[%c0_6, %c0_7] : memref<2x8xf32, #tpu.memory_space<vmem>>, vector<2x8xf32>
    tpu.vector_store %arg6[%c0_6, %c0_7], %7 {strides = array<i32>} : memref<2x8xf32, #tpu.memory_space<vmem>>, vector<2x8xf32>,
    %c0_i32_8 = arith.constant 0 : i32
    %9 = arith.cmpi eq, %arg1, %c0_i32_8 : i32
    %10 = arith.extui %9 : i1 to i32
    %c0_i32_9 = arith.constant 0 : i32
    %11 = arith.cmpi ne, %10, %c0_i32_9 : i32
    scf.if %11 {
      %c0_10 = arith.constant 0 : index
      %c0_11 = arith.constant 0 : index
      %12 = vector.load %arg6[%c0_10, %c0_11] : memref<2x8xf32, #tpu.memory_space<vmem>>, vector<2x8xf32>
      %c0_12 = arith.constant 0 : index
      %c0_13 = arith.constant 0 : index
      %13 = vector.load %arg4[%c0_12, %c0_13] : memref<1x8xf32, #tpu.memory_space<vmem>>, vector<1x8xf32>
      %14 = vector.broadcast %13 : vector<1x8xf32> to vector<2x8xf32>
      %15 = arith.addf %12, %14 : vector<2x8xf32>
      %c0_14 = arith.constant 0 : index
      %c0_15 = arith.constant 0 : index
      %16 = vector.load %arg5[%c0_14, %c0_15] : memref<2x8xf32, #tpu.memory_space<vmem>>, vector<2x8xf32>
      tpu.vector_store %arg5[%c0_14, %c0_15], %15 {strides = array<i32>} : memref<2x8xf32, #tpu.memory_space<vmem>>, vector<2x8xf32>,
    } else {
    }
    return
  }
  func.func @transform_0(%arg0: i32, %arg1: i32) -> (i32, i32) {
    %c0_i32 = arith.constant 0 : i32
    return %arg0, %arg1 : i32, i32
  }
  func.func @transform_1(%arg0: i32, %arg1: i32) -> (i32, i32) {
    %c0_i32 = arith.constant 0 : i32
    %c0_i32_0 = arith.constant 0 : i32
    return %arg1, %c0_i32 : i32, i32
  }
  func.func @transform_2(%arg0: i32, %arg1: i32) -> (i32, i32) {
    %c0_i32 = arith.constant 0 : i32
    %c0_i32_0 = arith.constant 0 : i32
    %c0_i32_1 = arith.constant 0 : i32
    return %c0_i32, %c0_i32_0 : i32, i32
  }
  func.func @transform_3(%arg0: i32, %arg1: i32) -> (i32, i32) {
    %c0_i32 = arith.constant 0 : i32
    %c0_i32_0 = arith.constant 0 : i32
    return %arg0, %c0_i32 : i32, i32
  }
}

</mosaic_0001>

<bundles_post_ra>
// kernel: tpu_custom_call.1
= control target key start
LH: loop header
LB: loop body
LE: loop exit
PB: predicated region body
PF: predicated region fallthrough
CT: control target
= control target key end

     0   :  { %s397_s0 = inlined_call_operand.vmem [shape: f32[2,256], index: 0, kind: input, shape index: {}]   ;;  %s398_s1 = inlined_call_operand.vmem [shape: f32[256,8], index: 1, kind: input, shape index: {}]   ;;  %s399_s2 = inlined_call_operand.vmem [shape: f32[1,8], index: 2, kind: input, shape index: {}]   ;;  %s400_s3 = inlined_call_operand.hbm [shape: f32[2,8], index: 3, kind: output, shape index: {}]  }
   0x1   :  { %v39_v0 = vld [vmem:[%s398_s1 + $0x80] sm:$0xff]  ;;  %v40_v1 = vld [vmem:[%s398_s1 + $0x88] sm:$0xff]  ;;  %v41_v5 = vld [vmem:[%s398_s1 + $0x90] sm:$0xff] }
   0x2   :  { %v23_v2 = vld [vmem:[%s398_s1] sm:$0xff]  ;;  %v203_v3 = vpack.c.bf16 %v40_v1, %v39_v0  ;;  %v24_v4 = vld [vmem:[%s398_s1 + $0x8] sm:$0xff]  ;;  %v42_v6 = vld [vmem:[%s398_s1 + $0x98] sm:$0xff] }
   0x3   :  { %v205_v7 = vpack.c.bf16 %v24_v4, %v23_v2  ;;  %v207_v8 = vpack.c.bf16 %v42_v6, %v41_v5  ;;  %v25_v9 = vld [vmem:[%s398_s1 + $0x10] sm:$0xff]  ;;  %v26_v10 = vld [vmem:[%s398_s1 + $0x18] sm:$0xff]  ;;  %v43_v11 = vld [vmem:[%s398_s1 + $0xa0] sm:$0xff] }
   0x4   :  { %204 = vmatprep.subr.bf16.mxu0 %v203_v3  ;;  %v44_v12 = vld [vmem:[%s398_s1 + $0xa8] sm:$0xff]  ;;  %v209_v13 = vpack.c.bf16 %v26_v10, %v25_v9  ;;  %v27_v15 = vld [vmem:[%s398_s1 + $0x20] sm:$0xff]  ;;  %v45_v17 = vld [vmem:[%s398_s1 + $0xb0] sm:$0xff] }
   0x5   :  { %206 = vmatpush3.bf16.msra.mxu0 %v205_v7  ;;  %v211_v14 = vpack.c.bf16 %v44_v12, %v43_v11  ;;  %v28_v16 = vld [vmem:[%s398_s1 + $0x28] sm:$0xff]  ;;  %v46_v18 = vld [vmem:[%s398_s1 + $0xb8] sm:$0xff]  ;;  %v29_v21 = vld [vmem:[%s398_s1 + $0x30] sm:$0xff] }
   0x6   :  { %208 = vmatprep.subr.bf16.mxu0 %v207_v8  ;;  %v213_v19 = vpack.c.bf16 %v28_v16, %v27_v15  ;;  %v215_v20 = vpack.c.bf16 %v46_v18, %v45_v17  ;;  %v30_v22 = vld [vmem:[%s398_s1 + $0x38] sm:$0xff]  ;;  %v47_v23 = vld [vmem:[%s398_s1 + $0xc0] sm:$0xff]  ;;  %v48_v24 = vld [vmem:[%s398_s1 + $0xc8] sm:$0xff] }
   0x7   :  { %v166_v25 = vld.sshfl [vmem:[%s397_s0] sm:$0x33 pattern:$0x76325410] }
   0x8   :  { %v63_v26 = vcombine.high %v166_v25, %v166_v25 }
   0x9   :  { %210 = vmatpush3.bf16.msra.mxu0 %v209_v13 }
   0xa   :  { %212 = vmatprep.subr.bf16.mxu0 %v211_v14 }
   0xb   :  { %8 = vsyncpa [#allocation4], 0  ;;  %v217_v27 = vpack.c.bf16 %v30_v22, %v29_v21  ;;  %v219_v28 = vpack.c.bf16 %v48_v24, %v47_v23  ;;  %v31_v29 = vld [vmem:[%s398_s1 + $0x40] sm:$0xff]  ;;  %v32_v30 = vld [vmem:[%s398_s1 + $0x48] sm:$0xff]  ;;  %130 = vmatprep.mubr.f32.mxu0 %v63_v26  ;;  %vm19_vm0 = vcmask 58368   ;;  %v261_v50 = vmov 0.0  }
   0xc   :  { %v49_v31 = vld [vmem:[%s398_s1 + $0xd0] sm:$0xff]  ;;  %v50_v32 = vld [vmem:[%s398_s1 + $0xd8] sm:$0xff]  ;;  %v221_v33 = vpack.c.bf16 %v32_v30, %v31_v29  ;;  %v51_v37 = vld [vmem:[%s398_s1 + $0xe0] sm:$0xff]  ;;  %20 = vst.msk [vmem:[#allocation2] sm:$0x3] %vm19_vm0, %v261_v50  ;;  %s262_s25 = smov [#allocation3]  }
   0xd   :  { %214 = vmatpush3.bf16.msra.mxu0 %v213_v19  ;;  %v223_v34 = vpack.c.bf16 %v50_v32, %v49_v31  ;;  %v33_v35 = vld [vmem:[%s398_s1 + $0x50] sm:$0xff]  ;;  %v34_v36 = vld [vmem:[%s398_s1 + $0x58] sm:$0xff]  ;;  %v52_v38 = vld [vmem:[%s398_s1 + $0xe8] sm:$0xff] }
   0xe   :  { %216 = vmatprep.subr.bf16.mxu0 %v215_v20  ;;  %v225_v39 = vpack.c.bf16 %v34_v36, %v33_v35  ;;  %v227_v40 = vpack.c.bf16 %v52_v38, %v51_v37  ;;  %v35_v41 = vld [vmem:[%s398_s1 + $0x60] sm:$0xff]  ;;  %v36_v42 = vld [vmem:[%s398_s1 + $0x68] sm:$0xff]  ;;  %v53_v43 = vld [vmem:[%s398_s1 + $0xf0] sm:$0xff] }
   0xf   :  { %v54_v44 = vld [vmem:[%s398_s1 + $0xf8] sm:$0xff]  ;;  %v229_v45 = vpack.c.bf16 %v36_v42, %v35_v41  ;;  %v37_v47 = vld [vmem:[%s398_s1 + $0x70] sm:$0xff]  ;;  %v167_v56 = vld [vmem:[%s399_s2] ss:$0 sm:$0xff] }
  0x10   :  { %v231_v46 = vpack.c.bf16 %v54_v44, %v53_v43  ;;  %v38_v48 = vld [vmem:[%s398_s1 + $0x78] sm:$0xff]  ;;  %s158_s1 = sshll.u32 %s262_s25, 4  ;;  %s159_s1 = int_to_ptr.vmem [resolvable:$true] %s158_s1 }
  0x11   :  { %218 = vmatpush3.bf16.msra.mxu0 %v217_v27  ;;  %v233_v49 = vpack.c.bf16 %v38_v48, %v37_v47  ;;  %s237_s26 = scalar_lea.vmem %s159_s1, 32  ;;  %p242_p1 = scmp.lt.s32.totalorder %s159_s1, %s159_s1 }
  0x12   :  { %220 = vmatprep.subr.bf16.mxu0 %v219_v28  ;;  %p238_p0 = scmp.ne.s32.totalorder %s159_s1, %s237_s26  ;;  %p243_p2 = scmp.lt.s32.totalorder %s237_s26, %s237_s26 }
  0x13   :  { %v21_v52 = vld [vmem:[#allocation2] sm:$0x3] }
  0x14   :  { %p244_p3 = por %p243_p2, %p242_p1 }
  0x15   :  { %222 = vmatpush3.bf16.msra.mxu0 %v221_v33 }
  0x16   :  { %224 = vmatprep.subr.bf16.mxu0 %v223_v34  ;;  %p245_p4 = pnand %p244_p3, %p238_p0 }
  0x19   :  { %226 = vmatpush3.bf16.msra.mxu0 %v225_v39 }
  0x1a   :  { %228 = vmatprep.subr.bf16.mxu0 %v227_v40 }
  0x1d   :  { %230 = vmatpush3.bf16.msra.mxu0 %v229_v45 }
  0x1e   :  { %232 = vmatprep.subr.bf16.mxu0 %v231_v46 }
  0x21   :  { %234 = vmatpush3.bf16.msra.mxu0 %v233_v49 }
  0x24   :  { %131 = vmatmul.mubr.f32.vlgmr.msra.gmra.mrb[0].mxu0 %v166_v25 }
  0xf7   :  { %v200_v51 = vpop.f32.mrb[0].mxu0 }
  0xf8   :  { %v201_v53 = vpop.f32.mrb[1].mxu0 }
  0xf9   :  { %v202_v54 = vadd.f32 %v201_v53, %v200_v51 }
  0xfb   :  { %v136_v55 = vadd.f32 %v202_v54, %v21_v52 }
  0xfd   :  { %138 = vst.msk [vmem:[#allocation2] sm:$0x3] %vm19_vm0, %v136_v55 }
 0x104   :  { %v142_v57 = vld [vmem:[#allocation2] sm:$0x3] }
 0x105   :  { %v150_v58 = vadd.f32 %v167_v56, %v142_v57 }
 0x107   :  { %151 = vst.msk [vmem:[#allocation3] sm:$0x3] %vm19_vm0, %v150_v58 }
 0x108   :  { %248 = shalt.err (!%p245_p4)
}
 0x109   :  { %s249_s0 = scalar_lea.hbm %s400_s3, 32 }
 0x10a   :  { %p250_p5 = scmp.ne.s32.totalorder %s400_s3, %s249_s0  ;;  %p253_p6 = scmp.lt.u32.totalorder %s249_s0, %s400_s3 }
 0x10c   :  { %p255_p7 = pnand %p253_p6, %p250_p5 }
 0x10e   :  { %258 = shalt.err (!%p255_p7)
}
 0x10f   :  { %161 = dma.vmem_to_hbm [thread:$0]  %s159_s1, 32, %s400_s3, [#allocation4]  }
 0x110   :  { %259 = dma.done.wait [#allocation4], 32  }
 0x111   :  { %260 = vsyncadd [#allocation4], 4294967264 }
 0x112   :  { %165 = vsyncpa [#allocation4], 1 }

</bundles_post_ra>
